<compile_context>
chip_gen: v7x
topology: tpu7x:2x2x1
jax: 0.10.0
libtpu: 0.0.40
codegen_flags: <defaults>
</compile_context>

<pallas_src>
import functools

import jax
import jax.numpy as jnp
from jax.experimental import pallas as pl
from jax.experimental.pallas import tpu as pltpu

_INV_SQRT2 = 0.7071067811865476
_SQRT_2_OVER_PI = 0.7978845608028654
_H_CHUNK = 1024  # max hidden-dim chunk processed at once inside the kernel


def _round_up(a, b):
    return (a + b - 1) // b * b


def _gelu(h, approx):
    if approx:
        # tanh-approx GELU: routes through the (otherwise idle) EUP slot.
        return 0.5 * h * (1.0 + jnp.tanh(_SQRT_2_OVER_PI * (h + 0.044715 * h * h * h)))
    # exact GELU (matches nn.GELU() default, approximate='none')
    return 0.5 * h * (1.0 + jax.lax.erf(h * jnp.float32(_INV_SQRT2)))


def adapter_kernel(x_ref, w1_ref, b1_ref, w2_ref, b2_ref, o_ref, *, approx_gelu):
    x = x_ref[...]                              # (tn, D), input dtype (f32)
    x_mx = x.astype(w1_ref.dtype)               # bf16 (or f32) operand for the MXU

    H = w1_ref.shape[1]
    hc = min(H, _H_CHUNK)
    n_chunks = (H + hc - 1) // hc               # static

    acc = None                                  # (tn, D) f32 partial sum of fc2
    for c in range(n_chunks):
        lo = c * hc
        hi = min(H, lo + hc)
        # fc1 chunk: (tn, D) @ (D, hc) -> f32, + bias, GELU in f32
        h = jnp.dot(x_mx, w1_ref[:, lo:hi], preferred_element_type=jnp.float32)
        h = h + b1_ref[:, lo:hi]
        h = _gelu(h, approx_gelu)
        # fc2 chunk accumulate: (tn, hc) @ (hc, D) -> f32
        part = jnp.dot(h.astype(w2_ref.dtype), w2_ref[lo:hi, :],
                       preferred_element_type=jnp.float32)
        acc = part if acc is None else acc + part

    y = acc + b2_ref[...]
    # skip connection (f32)
    o_ref[...] = (x.astype(jnp.float32) + y).astype(o_ref.dtype)


def _vmem_limit_bytes():
    """Generation-aware scoped-VMEM limit."""
    phys = None
    try:
        info = pltpu.get_tpu_info()
        phys = getattr(info, "vmem_capacity_bytes", None)
    except Exception:
        phys = None
    if phys is None:
        phys = 64 * 1024 * 1024                 # conservative: assume v7x
    if phys >= 128 * 1024 * 1024:               # v5e / v6e
        return 64 * 1024 * 1024
    return 44 * 1024 * 1024                     # v7x: headroom under 64 MiB


def adapter_forward(x, w1, b1, w2, b2, *, row_tile=1024,
                    use_bf16_matmul=True, approx_gelu=False):
    """x: (..., D).  w1: (D, H), b1: (H,), w2: (H, D), b2: (D,)."""
    orig_shape = x.shape
    D = orig_shape[-1]
    H = w1.shape[1]
    x2d = x.reshape(-1, D)
    N = x2d.shape[0]

    # ---- operand prep: weights to bf16 for the MXU, biases kept f32 --------
    mx_dtype = jnp.bfloat16 if use_bf16_matmul else x.dtype
    w1_k = w1.astype(mx_dtype)
    w2_k = w2.astype(mx_dtype)
    b1_k = b1.reshape(1, H).astype(jnp.float32)
    b2_k = b2.reshape(1, D).astype(jnp.float32)
    w_bytes = 2 if use_bf16_matmul else 4

    # ---- VMEM budget + row-tile selection ----------------------------------
    vmem_limit = _vmem_limit_bytes()
    budget = int(vmem_limit * 0.85)
    hc = min(H, _H_CHUNK)

    def vmem_bytes(t):
        act = 2 * 2 * t * D * 4                              # x + out tiles, double-buffered
        wts = 2 * ((D * H + H * D) * w_bytes + (H + D) * 4)  # weights/biases (2 buffers each)
        hid = 2 * t * hc * 4                                  # fc1 chunk + gelu live values
        acc = t * D * 4                                       # fc2 accumulator
        return act + wts + hid + acc

    tn = _round_up(max(8, min(row_tile, N)), 8)
    # give the "parallel" grid enough steps to feed both v7x TensorCores
    min_steps = 4
    if N > 8 and pl.cdiv(N, tn) < min_steps:
        tn = max(8, _round_up(pl.cdiv(N, min_steps), 8))
    while tn > 8 and vmem_bytes(tn) > budget:
        tn = max(8, _round_up(tn // 2, 8))

    grid = (pl.cdiv(N, tn),)   # ragged last block is masked by Pallas

    cost = pl.CostEstimate(
        flops=4 * N * D * H,                                   # two matmuls
        transcendentals=N * H,                                 # erf / tanh
        bytes_accessed=2 * N * D * 4 + 2 * D * H * w_bytes + (H + D) * 4,
    )

    kernel = functools.partial(adapter_kernel, approx_gelu=approx_gelu)

    out = pl.pallas_call(
        kernel,
        out_shape=jax.ShapeDtypeStruct((N, D), x.dtype),
        grid_spec=pltpu.PrefetchScalarGridSpec(
            num_scalar_prefetch=0,
            grid=grid,
            in_specs=[
                pl.BlockSpec((tn, D), lambda i: (i, 0)),   # x tile (pipelined)
                pl.BlockSpec((D, H), lambda i: (0, 0)),    # w1 (resident)
                pl.BlockSpec((1, H), lambda i: (0, 0)),    # b1 (resident)
                pl.BlockSpec((H, D), lambda i: (0, 0)),    # w2 (resident)
                pl.BlockSpec((1, D), lambda i: (0, 0)),    # b2 (resident)
            ],
            out_specs=pl.BlockSpec((tn, D), lambda i: (i, 0)),
        ),
        compiler_params=pltpu.CompilerParams(
            dimension_semantics=("parallel",),
            vmem_limit_bytes=vmem_limit,
        ),
        cost_estimate=cost,
    )(x2d, w1_k, b1_k, w2_k, b2_k)

    return out.reshape(orig_shape)


if __name__ == "__main__":
    # Small shapes consistent with the module: tokens of width D_features.
    B, S, D = 2, 8, 32                 # batch, seq, D_features
    H = int(D * 0.25)                  # D_hidden_features = 8

    key = jax.random.PRNGKey(0)
    kx, k1, k2, k3, k4 = jax.random.split(key, 5)

    x = jax.random.normal(kx, (B, S, D), dtype=jnp.float32)

    # Deterministic parameter init (kernel expects weights as (in, out)).
    w1 = jax.random.normal(k1, (D, H), dtype=jnp.float32) * 0.05
    b1 = jax.random.normal(k2, (H,), dtype=jnp.float32) * 0.05
    w2 = jax.random.normal(k3, (H, D), dtype=jnp.float32) * 0.05
    b2 = jax.random.normal(k4, (D,), dtype=jnp.float32) * 0.05

    # Reference in plain JAX (exact-GELU adapter with skip connection).
    h_ref = x @ w1 + b1
    h_ref = 0.5 * h_ref * (1.0 + jax.lax.erf(h_ref / jnp.sqrt(2.0)))
    ref = x + (h_ref @ w2 + b2)

    # Default path: bf16 MXU operands, f32 accumulate / GELU / residual.
    out = adapter_forward(x, w1, b1, w2, b2)
    jax.block_until_ready(out)
    assert jnp.allclose(out, ref, atol=1e-2, rtol=1e-2), "mismatch vs reference (bf16 MXU)"

    # Full-precision path: exact parity with the PyTorch module.
    out_f32 = adapter_forward(x, w1, b1, w2, b2, use_bf16_matmul=False)
    jax.block_until_ready(out_f32)
    assert jnp.allclose(out_f32, ref, atol=1e-5, rtol=1e-5), "mismatch vs reference (f32)"

    print("KERNEL_OK")
</pallas_src>

<mosaic_0001>
module attributes {stable_mosaic.version = 11 : i64} {
  func.func @adapter_kernel(%arg0: i32, %arg1: memref<8x32xf32, #tpu.memory_space<vmem>>, %arg2: memref<32x8xbf16, #tpu.memory_space<vmem>>, %arg3: memref<1x8xf32, #tpu.memory_space<vmem>>, %arg4: memref<8x32xbf16, #tpu.memory_space<vmem>>, %arg5: memref<1x32xf32, #tpu.memory_space<vmem>>, %arg6: memref<8x32xf32, #tpu.memory_space<vmem>>) attributes {dimension_semantics = [#tpu.dimension_semantics<parallel>], iteration_bounds = array<i64: 2>, scalar_prefetch = 0 : i64, scratch_operands = 0 : i64, tpu.core_type = #tpu.core_type<tc>, window_params = [{transform_indices = @transform_0, window_bounds = array<i64: 8, 32>}, {pipeline_mode = #tpu.pipeline_mode<synchronous>, transform_indices = @transform_1, window_bounds = array<i64: 32, 8>}, {pipeline_mode = #tpu.pipeline_mode<synchronous>, transform_indices = @transform_2, window_bounds = array<i64: 1, 8>}, {pipeline_mode = #tpu.pipeline_mode<synchronous>, transform_indices = @transform_3, window_bounds = array<i64: 8, 32>}, {pipeline_mode = #tpu.pipeline_mode<synchronous>, transform_indices = @transform_4, window_bounds = array<i64: 1, 32>}, {transform_indices = @transform_5, window_bounds = array<i64: 8, 32>}]} {
    %c0 = arith.constant 0 : index
    %c0_0 = arith.constant 0 : index
    %0 = vector.load %arg1[%c0, %c0_0] : memref<8x32xf32, #tpu.memory_space<vmem>>, vector<8x32xf32>
    %1 = arith.truncf %0 : vector<8x32xf32> to vector<8x32xbf16>
    %c0_1 = arith.constant 0 : index
    %c0_2 = arith.constant 0 : index
    %2 = vector.load %arg2[%c0_1, %c0_2] : memref<32x8xbf16, #tpu.memory_space<vmem>>, vector<32x8xbf16>
    %cst = arith.constant dense<0.000000e+00> : vector<8x8xf32>
    %3 = tpu.matmul %1, %2, %cst {dimension_numbers = #tpu.dot_dimension_numbers<[1], [0], [0], [1], [0, 0, 1, 1], [], []>} : vector<8x32xbf16>, vector<32x8xbf16>, vector<8x8xf32> -> vector<8x8xf32>
    %c0_3 = arith.constant 0 : index
    %c0_4 = arith.constant 0 : index
    %4 = vector.load %arg3[%c0_3, %c0_4] : memref<1x8xf32, #tpu.memory_space<vmem>>, vector<1x8xf32>
    %5 = vector.broadcast %4 : vector<1x8xf32> to vector<8x8xf32>
    %6 = arith.addf %3, %5 : vector<8x8xf32>
    %cst_5 = arith.constant 5.000000e-01 : f32
    %7 = vector.broadcast %cst_5 : f32 to vector<8x8xf32>
    %8 = arith.mulf %7, %6 : vector<8x8xf32>
    %cst_6 = arith.constant 0.707106769 : f32
    %9 = vector.broadcast %cst_6 : f32 to vector<8x8xf32>
    %10 = arith.mulf %6, %9 : vector<8x8xf32>
    %11 = math.erf %10 : vector<8x8xf32>
    %cst_7 = arith.constant 1.000000e+00 : f32
    %12 = vector.broadcast %cst_7 : f32 to vector<8x8xf32>
    %13 = arith.addf %12, %11 : vector<8x8xf32>
    %14 = arith.mulf %8, %13 : vector<8x8xf32>
    %15 = arith.truncf %14 : vector<8x8xf32> to vector<8x8xbf16>
    %c0_8 = arith.constant 0 : index
    %c0_9 = arith.constant 0 : index
    %16 = vector.load %arg4[%c0_8, %c0_9] : memref<8x32xbf16, #tpu.memory_space<vmem>>, vector<8x32xbf16>
    %cst_10 = arith.constant dense<0.000000e+00> : vector<8x32xf32>
    %17 = tpu.matmul %15, %16, %cst_10 {dimension_numbers = #tpu.dot_dimension_numbers<[1], [0], [0], [1], [0, 0, 1, 1], [], []>} : vector<8x8xbf16>, vector<8x32xbf16>, vector<8x32xf32> -> vector<8x32xf32>
    %c0_11 = arith.constant 0 : index
    %c0_12 = arith.constant 0 : index
    %18 = vector.load %arg5[%c0_11, %c0_12] : memref<1x32xf32, #tpu.memory_space<vmem>>, vector<1x32xf32>
    %19 = vector.broadcast %18 : vector<1x32xf32> to vector<8x32xf32>
    %20 = arith.addf %17, %19 : vector<8x32xf32>
    %21 = arith.addf %0, %20 : vector<8x32xf32>
    %c0_13 = arith.constant 0 : index
    %c0_14 = arith.constant 0 : index
    %22 = vector.load %arg6[%c0_13, %c0_14] : memref<8x32xf32, #tpu.memory_space<vmem>>, vector<8x32xf32>
    tpu.vector_store %arg6[%c0_13, %c0_14], %21 {strides = array<i32>} : memref<8x32xf32, #tpu.memory_space<vmem>>, vector<8x32xf32>,
    return
  }
  func.func @transform_0(%arg0: i32) -> (i32, i32) {
    %c0_i32 = arith.constant 0 : i32
    %c0_i32_0 = arith.constant 0 : i32
    return %arg0, %c0_i32 : i32, i32
  }
  func.func @transform_1(%arg0: i32) -> (i32, i32) {
    %c0_i32 = arith.constant 0 : i32
    %c0_i32_0 = arith.constant 0 : i32
    %c0_i32_1 = arith.constant 0 : i32
    return %c0_i32, %c0_i32_0 : i32, i32
  }
  func.func @transform_2(%arg0: i32) -> (i32, i32) {
    %c0_i32 = arith.constant 0 : i32
    %c0_i32_0 = arith.constant 0 : i32
    %c0_i32_1 = arith.constant 0 : i32
    return %c0_i32, %c0_i32_0 : i32, i32
  }
  func.func @transform_3(%arg0: i32) -> (i32, i32) {
    %c0_i32 = arith.constant 0 : i32
    %c0_i32_0 = arith.constant 0 : i32
    %c0_i32_1 = arith.constant 0 : i32
    return %c0_i32, %c0_i32_0 : i32, i32
  }
  func.func @transform_4(%arg0: i32) -> (i32, i32) {
    %c0_i32 = arith.constant 0 : i32
    %c0_i32_0 = arith.constant 0 : i32
    %c0_i32_1 = arith.constant 0 : i32
    return %c0_i32, %c0_i32_0 : i32, i32
  }
  func.func @transform_5(%arg0: i32) -> (i32, i32) {
    %c0_i32 = arith.constant 0 : i32
    %c0_i32_0 = arith.constant 0 : i32
    return %arg0, %c0_i32 : i32, i32
  }
}

</mosaic_0001>

<bundles_post_ra>
// kernel: tpu_custom_call.1
= control target key start
LH: loop header
LB: loop body
LE: loop exit
PB: predicated region body
PF: predicated region fallthrough
CT: control target
= control target key end

     0   :  { %10 = vsyncpa [#allocation3], 0  ;;  %s721_s0 = inlined_call_operand.vmem [shape: f32[16,32], index: 0, kind: input, shape index: {}]   ;;  %s722_s1 = inlined_call_operand.vmem [shape: bf16[32,8], index: 1, kind: input, shape index: {}]   ;;  %s723_s2 = inlined_call_operand.vmem [shape: f32[1,8], index: 2, kind: input, shape index: {}]   ;;  %s724_s3 = inlined_call_operand.vmem [shape: bf16[8,32], index: 3, kind: input, shape index: {}]   ;;  %s725_s4 = inlined_call_operand.vmem [shape: f32[1,32], index: 4, kind: input, shape index: {}]   ;;  %s726_s5 = inlined_call_operand.hbm [shape: f32[16,32], index: 5, kind: output, shape index: {}]  }
   0x1   :  { %12 = vsyncpa [#allocation3 + $0x1], 0  ;;  %s604_s18 = smov 0   ;;  %s606_s19 = smov 0  }
   0x2   :  { %s608_s20 = smov 0   ;;  %s610_s21 = smov 0  }
   0x3 LB: > { %s625_s22 = sadd.s32 4294967295, %s569_s21   ;;  %s427_s23 = sadd.s32 4294967294, %s569_s21   ;;  %s569_s21 = sphi %s610_s21, %s732_s21   ;;  %s565_s20 = sphi %s608_s20, %s731_s20   ;;  %s561_s19 = sphi %s606_s19, %s730_s19   ;;  %s557_s18 = sphi %s604_s18, %s729_s18  }
   0x4   : > { %s629_s24 = sadd.s32 1, %s569_s21   ;;  %s135_s25 = sadd.s32 1, %s565_s20 }
   0x5   : > { %s132_s26 = ssub.s32 %s569_s21, %s629_s24  ;;  %p145_p0 = scmp.ne.s32.totalorder %s565_s20, %s561_s19 }
   0x6   : > { %p133_p1 = scmp.eq.s32.totalorder %s132_s26, 0  ;;  %p146_p2 = scmp.eq.s32.totalorder %s625_s22, 1 }
   0x7   : > { %p151_p3 = scmp.ne.s32.totalorder %s561_s19, %s557_s18  ;;  %p152_p4 = scmp.eq.s32.totalorder %s427_s23, 1 }
   0x8   : > { %s640_s27 = scalar_select %p133_p1, %s565_s20, %s135_s25  }
   0x9   : > { %p642_p5 = por %p146_p2, %p145_p0  ;;  %p646_p6 = por %p152_p4, %p151_p3 }
   0xa   : > { %p430_p7 = scmp.ge.s32.totalorder %s569_s21, 1  ;;  %p189_p8 = scmp.lt.s32.totalorder %s569_s21, 3 }
   0xc   : > { %p190_p9 = pnand %p430_p7, %p189_p8 }
   0xd   : > { %v503_v0 = vld [vmem:[%s722_s1] sm:$0xff] (!%p190_p9)   ;;  %v571_v1 = vmov (!%p190_p9), 0.0   ;;  %v504_v2 = vld [vmem:[%s722_s1 + $0x8] sm:$0xff] (!%p190_p9)   ;;  %vm572_vm0 = vmmov (!%p190_p9), 0   ;;  %p216_p10 = scmp.lt.s32.totalorder (!%p190_p9), %s625_s22, 1  ;;  %vm246_vm1 = vcmask (!%p190_p9), 261120  }
   0xe   : > { %193 = sbr.rel (%p190_p9) target bundleno = 491 (0x1eb), region = 40  ;;  %448 = vmatprep.subr.bf16.mxu0 (!%p190_p9), %v571_v1  ;;  %456 = vmatprep.subr.bf16.mxu1 (!%p190_p9), %v571_v1  ;;  %v296_v5 = vld [vmem:[%s724_s3] sm:$0xf] (!%p190_p9)  ;;  %vm308_vm2 = vcmask (!%p190_p9), 1043456   ;;  %vm304_vm3 = vcmask (!%p190_p9), 64512   ;;  %s213_s23 = sand.u32 (!%p190_p9), 1, %s561_s19  }
   0xf   : > { %449 = vmatpush3.bf16.msra.mxu0 (!%p190_p9), %v503_v0  ;;  %452 = vmatprep.mubr.msk.bf16.mxu0 (!%p190_p9), %vm572_vm0, %v571_v1  ;;  %v310_v6 = vsel (!%p190_p9), %vm308_vm2, %v296_v5, 0  ;;  %v433_v7 = vld [vmem:[%s723_s2] ss:$0 sm:$0xff] (!%p190_p9)  ;;  %s431_s25 = sshll.u32 (!%p190_p9), %s213_s23, 3  ;;  %s440_s6 = sshll.u32 (!%p190_p9), %s625_s22, 7 }
  0x10   : > { %450 = vmatprep.subr.bf16.mxu0 (!%p190_p9), %v571_v1  ;;  %458 = vmatprep.mubr.msk.bf16.mxu1 (!%p190_p9), %vm572_vm0, %v571_v1  ;;  %v437_v19 = vld [vmem:[%s725_s4] ss:$0 sm:$0xff] (!%p190_p9)  ;;  %s215_s7 = scalar_lea.vmem (!%p190_p9), [#allocation2], %s431_s25  ;;  %s678_s11 = scalar_lea.hbm (!%p190_p9), %s726_s5, %s440_s6 }
  0x11   : > { %457 = vmatpush3.bf16.msra.mxu1 (!%p190_p9), %v310_v6  ;;  %s368_s8 = sshll.u32 (!%p190_p9), %s215_s7, 4  ;;  %s680_s8 = int_to_ptr.vmem [resolvable:$true] %s368_s8 }
  0x12   : > { %s507_s12 = scalar_lea.vmem (!%p190_p9), %s680_s8, 128 }
  0x13   : > { %451 = vmatpush3.bf16.msra.mxu0 (!%p190_p9), %v504_v2  ;;  %p508_p11 = scmp.ne.s32.totalorder (!%p190_p9), %s680_s8, %s507_s12 }
  0x15   : > { %s217_s9 = scalar_select %p216_p10, %s625_s22, 1 }
  0x16   : > { %s355_s22 = scalar_lea.sflag [#allocation3], %s213_s23  ;;  %p509_p12 = pnand %p508_p11, %p642_p5 }
  0x17   : > { %s432_s10 = sshll.u32 %s217_s9, 3 }
  0x18   : > { %s219_s13 = scalar_lea.vmem %s721_s0, %s432_s10  ;;  %p510_p13 = pneg %p509_p12 }
  0x19   : > { %v221_v3 = vld [vmem:[%s219_s13] sm:$0xff]  ;;  %s573_s13 = smov [#allocation2]  }
  0x1a   : > { %v222_v4 = vpack.c.bf16 %v221_v3, %v221_v3  ;;  %s511_s14 = sshll.u32 %s573_s13, 4  ;;  %s512_s14 = int_to_ptr.vmem [resolvable:$false] %s511_s14 }
  0x1b   : > { %s513_s15 = scalar_lea.vmem %s512_s14, 256  ;;  %p514_p0 = scmp.lt.s32.totalorder %s680_s8, %s512_s14 }
  0x1c   : > { %453 = vmatmul.mubr.msk.bf16.vlgmr.msra.gmra.mrb[0].mxu0 %vm246_vm1, %v222_v4  ;;  %p515_p1 = scmp.lt.s32.totalorder %s513_s15, %s507_s12 }
  0x1e   : > { %p516_p2 = por %p515_p1, %p514_p0 }
  0x20   : > { %p517_p3 = pnand %p516_p2, %p510_p13 }
  0xef   : > { %v284_v8 = vpop.f32.mrb[0].mxu0 }
  0xf0   : > { %v285_v9 = vadd.f32 %v433_v7, %v284_v8  ;;  %v454_v10 = vpop.f32.mrb[1].mxu0 }
  0xf1   : > { %v287_v11 = vpop.f32.mrb[2].mxu0 }
  0xf2   : > { %v291_v12 = vmul.f32 0.70710677, %v285_v9  ;;  %v455_v13 = vpop.f32.mrb[3].mxu0  ;;  %v290_v15 = vmul.f32 0.5, %v285_v9 }
  0xf4   : > { %505 = verf.f32 %v291_v12 }
  0xfe   : > { %v506_v14 = vpop.eup %505 }
  0xff   : > { %v293_v16 = vadd.f32 1.0, %v506_v14 }
 0x101   : > { %v294_v17 = vmul.f32 %v293_v16, %v290_v15 }
 0x103   : > { %v295_v18 = vpack.c.bf16 %v294_v17, %v294_v17 }
 0x105   : > { %459 = vmatmul.mubr.msk.bf16.vlgmr.msra.gmra.mrb[0].mxu1 %vm304_vm3, %v295_v18 }
 0x1d8   : > { %v346_v20 = vpop.f32.mrb[0].mxu1 }
 0x1d9   : > { %v347_v21 = vadd.f32 %v437_v19, %v346_v20  ;;  %v460_v22 = vpop.f32.mrb[1].mxu1 }
 0x1da   : > { %v349_v23 = vpop.f32.mrb[2].mxu1 }
 0x1db   : > { %v352_v24 = vadd.f32 %v347_v21, %v221_v3  ;;  %v461_v25 = vpop.f32.mrb[3].mxu1 }
 0x1dd   : > { %353 = vst.msk [vmem:[%s215_s7] sm:$0xff] %vm246_vm1, %v352_v24 }
 0x1de   : > { %520 = shalt.err (!%p517_p3)
}
 0x1df   : > { %s521_s16 = scalar_lea.hbm %s678_s11, 128  ;;  %s525_s25 = scalar_lea.hbm %s726_s5, 256 }
 0x1e0   : > { %p522_p4 = scmp.ne.s32.totalorder %s678_s11, %s521_s16  ;;  %p526_p9 = scmp.lt.u32.totalorder %s678_s11, %s726_s5 }
 0x1e1   : > { %p527_p10 = scmp.lt.u32.totalorder %s525_s25, %s521_s16  ;;  %p529_p12 = scmp.lt.u32.totalorder %s521_s16, %s678_s11 }
 0x1e2   : > { %p523_p7 = pnand %p522_p4, %p642_p5 }
 0x1e3   : > { %p528_p11 = por %p527_p10, %p526_p9 }
 0x1e4   : > { %p524_p8 = pneg %p523_p7 }
 0x1e5   : > { %p530_p13 = por %p529_p12, %p528_p11 }
 0x1e7   : > { %p531_p0 = pnand %p530_p13, %p524_p8 }
 0x1e9   : > { %534 = shalt.err (!%p531_p0)
}
 0x1ea   : > { %462 = dma.vmem_to_hbm [thread:$0]  (%p642_p5), %s680_s8, 128, %s678_s11, %s355_s22  }
 0x1eb PF: > { %p468_p1 = scmp.ge.s32.totalorder %s569_s21, 2  ;;  %s380_s6 = sand.u32 1, %s557_s18  }
 0x1ec   : > { %s381_s7 = scalar_lea.sflag [#allocation3], %s380_s6 }
 0x1ed   : > { %p465_p2 = pnand %p468_p1, %p646_p6 }
 0x1ef   : > { %552 = dma.done.wait (!%p465_p2), %s381_s7, 128  }
 0x1f0   : > { %554 = vsyncadd (!%p465_p2), %s381_s7, 4294967168  ;;  %p15_p3 = scmp.ge.s32.totalorder %s629_s24, 4   ;;  %s729_s18 = smov %s561_s19 }
 0x1f1   : > { %s730_s19 = smov %s565_s20  ;;  %s731_s20 = smov %s640_s27 }
 0x1f2   : > { %s732_s21 = smov %s629_s24  ;;  %17 = sbr.rel (!%p15_p3) target bundleno = 3 (0x3), region = 75 }
 0x1f9   :  { %386 = vsyncpa [#allocation3], 1 }
 0x1fa   :  { %388 = vsyncpa [#allocation3 + $0x1], 1 }

</bundles_post_ra>
